<compile_context>
chip_gen: v5e
topology: v5e:2x2
jax: 0.10.0
libtpu: 0.0.40
codegen_flags: <defaults>
</compile_context>

<pallas_src>
import functools

import jax
import jax.numpy as jnp
from jax.experimental import pallas as pl
from jax.experimental.pallas import tpu as pltpu


def _round_up(n, m):
    return (n + m - 1) // m * m


def _lstm_internal_kernel(w_ref, rhs_ref, b_ref, out_ref, *, activation):
    # Single fused MXU matmul: (M_pad, K_pad) @ (K_pad, B_pad) -> (M_pad, B_pad)
    # with bf16 operands and f32 accumulation.
    pre = jnp.dot(w_ref[...], rhs_ref[...],
                  preferred_element_type=jnp.float32)
    # Bias: (1, B_pad) broadcasting over rows == PyTorch's `... + self.bias`
    # against a (dim_out, B) tensor (broadcast over the last / batch axis).
    pre = pre + b_ref[...]
    out_ref[...] = activation(pre).astype(out_ref.dtype)


@functools.partial(jax.jit, static_argnames=("activation",))
def lstm_internal_layer(weights_x, weights_h, bias, x, h,
                        activation=jax.nn.sigmoid):
    """Pallas forward of LSTMInternalLayer.

    weights_x: (dim_out, dim_x)
    weights_h: (dim_out, dim_h)
    bias:      (dim_out,)
    x:         (B, dim_x)
    h:         (dim_h, B)
    returns:   (dim_out, B), float32
    """
    dim_out, dim_x = weights_x.shape
    dh_out, dim_h = weights_h.shape
    B = x.shape[0]
    assert dh_out == dim_out
    assert x.shape == (B, dim_x)
    assert h.shape == (dim_h, B)
    # PyTorch broadcasts the (dim_out,) bias over the last (batch) axis of the
    # (dim_out, B) pre-activation, which requires B == dim_out. Replicated.
    assert B == dim_out, "original module's bias broadcast requires B == dim_out"

    K = dim_x + dim_h
    K_pad = _round_up(max(K, 128), 128)     # aligned contraction axis
    B_pad = _round_up(max(B, 128), 128)     # lane-dense output (unmasked vst)
    M_pad = _round_up(max(dim_out, 8), 8)   # clean sublane tiling

    # Fused weights [Wx | Wh] -> bf16 for full-rate MXU, zero-padded on M & K.
    w = jnp.concatenate([weights_x, weights_h], axis=1).astype(jnp.bfloat16)
    w = jnp.pad(w, ((0, M_pad - dim_out), (0, K_pad - K)))

    # Fused RHS [x.T ; h] -> bf16, zero-padded on K and B.  The transpose is
    # done here (XLA wrapper), so the kernel needs no XLU transpose.
    rhs = jnp.concatenate([x.T, h], axis=0).astype(jnp.bfloat16)
    rhs = jnp.pad(rhs, ((0, K_pad - K), (0, B_pad - B)))

    # Bias broadcast over the batch axis (PyTorch semantics), zero-padded, f32.
    bias2d = jnp.pad(bias.astype(jnp.float32), (0, B_pad - B)).reshape(1, B_pad)

    kernel = functools.partial(_lstm_internal_kernel, activation=activation)

    vmem = pltpu.MemorySpace.VMEM
    out_padded = pl.pallas_call(
        kernel,
        out_shape=jax.ShapeDtypeStruct((M_pad, B_pad), jnp.float32),
        in_specs=[
            pl.BlockSpec(memory_space=vmem),  # fused W   (M_pad, K_pad) bf16
            pl.BlockSpec(memory_space=vmem),  # fused RHS (K_pad, B_pad) bf16
            pl.BlockSpec(memory_space=vmem),  # bias      (1, B_pad)     f32
        ],
        out_specs=pl.BlockSpec(memory_space=vmem),
    )(w, rhs, bias2d)

    # TODO(synk): for a real LSTM workload, stack all 4 gates and run the full
    # timestep recurrence inside one gridded pallas_call (weights resident in
    # VMEM, h in scratch); a single-gate single-step call is launch/DMA bound.
    return out_padded[:dim_out, :B]


def kaiming_normal(key, shape):
    # torch.nn.init.kaiming_normal_ defaults: a=0, mode='fan_in',
    # nonlinearity='leaky_relu' -> gain=sqrt(2), std = sqrt(2 / fan_in).
    fan_in = shape[1]
    std = (2.0 / fan_in) ** 0.5
    return std * jax.random.normal(key, shape, dtype=jnp.float32)


if __name__ == "__main__":
    # Small shapes consistent with the module's forward.  B == dim_out so the
    # PyTorch bias broadcast (over the batch axis) is well defined.
    dim_x, dim_h, dim_out, B = 16, 64, 32, 32

    key = jax.random.PRNGKey(0)
    k_wx, k_wh, k_x, k_h = jax.random.split(key, 4)

    weights_x = kaiming_normal(k_wx, (dim_out, dim_x))
    weights_h = kaiming_normal(k_wh, (dim_out, dim_h))
    bias = jnp.zeros((dim_out,), dtype=jnp.float32)  # init='zeros_'

    x = jax.random.normal(k_x, (B, dim_x), dtype=jnp.float32)
    h = jax.random.normal(k_h, (dim_h, B), dtype=jnp.float32)

    activation = jax.nn.sigmoid  # activation_fn (e.g. gate activation)

    out = lstm_internal_layer(weights_x, weights_h, bias, x, h,
                              activation=activation)
    out = jax.block_until_ready(out)
    assert out.shape == (dim_out, B)

    # Pure-JAX f32 reference (same semantics as the PyTorch forward).
    ref_f32 = activation(weights_x @ x.T + weights_h @ h + bias)

    # Reference modeling the kernel's bf16-in / f32-accumulate MXU path.
    wxb = weights_x.astype(jnp.bfloat16).astype(jnp.float32)
    whb = weights_h.astype(jnp.bfloat16).astype(jnp.float32)
    xb = x.astype(jnp.bfloat16).astype(jnp.float32)
    hb = h.astype(jnp.bfloat16).astype(jnp.float32)
    ref_bf16 = activation(wxb @ xb.T + whb @ hb + bias)

    assert jnp.allclose(out, ref_bf16, atol=1e-4, rtol=1e-4), \
        "mismatch vs bf16-operand reference"
    assert jnp.allclose(out, ref_f32, atol=2e-2, rtol=2e-2), \
        "mismatch vs f32 reference"

    print("KERNEL_OK")
</pallas_src>

<mosaic_0001>
module attributes {stable_mosaic.version = 11 : i64} {
  func.func @_lstm_internal_kernel(%arg0: memref<32x128xbf16, #tpu.memory_space<vmem>>, %arg1: memref<128x128xbf16, #tpu.memory_space<vmem>>, %arg2: memref<1x128xf32, #tpu.memory_space<vmem>>, %arg3: memref<32x128xf32, #tpu.memory_space<vmem>>) attributes {dimension_semantics = [], scalar_prefetch = 0 : i64, scratch_operands = 0 : i64, tpu.core_type = #tpu.core_type<tc>} {
    %c0 = arith.constant 0 : index
    %c0_0 = arith.constant 0 : index
    %0 = vector.load %arg0[%c0, %c0_0] : memref<32x128xbf16, #tpu.memory_space<vmem>>, vector<32x128xbf16>
    %c0_1 = arith.constant 0 : index
    %c0_2 = arith.constant 0 : index
    %1 = vector.load %arg1[%c0_1, %c0_2] : memref<128x128xbf16, #tpu.memory_space<vmem>>, vector<128x128xbf16>
    %cst = arith.constant dense<0.000000e+00> : vector<32x128xf32>
    %2 = tpu.matmul %0, %1, %cst {dimension_numbers = #tpu.dot_dimension_numbers<[1], [0], [0], [1], [0, 0, 1, 1], [], []>} : vector<32x128xbf16>, vector<128x128xbf16>, vector<32x128xf32> -> vector<32x128xf32>
    %c0_3 = arith.constant 0 : index
    %c0_4 = arith.constant 0 : index
    %3 = vector.load %arg2[%c0_3, %c0_4] : memref<1x128xf32, #tpu.memory_space<vmem>>, vector<1x128xf32>
    %4 = vector.broadcast %3 : vector<1x128xf32> to vector<32x128xf32>
    %5 = arith.addf %2, %4 : vector<32x128xf32>
    %6 = arith.negf %5 : vector<32x128xf32>
    %7 = math.exp %6 : vector<32x128xf32>
    %cst_5 = arith.constant 1.000000e+00 : f32
    %8 = vector.broadcast %cst_5 : f32 to vector<32x128xf32>
    %9 = arith.addf %8, %7 : vector<32x128xf32>
    %10 = arith.divf %8, %9 : vector<32x128xf32>
    %c0_6 = arith.constant 0 : index
    %c0_7 = arith.constant 0 : index
    %11 = vector.load %arg3[%c0_6, %c0_7] : memref<32x128xf32, #tpu.memory_space<vmem>>, vector<32x128xf32>
    tpu.vector_store %arg3[%c0_6, %c0_7], %10 {strides = array<i32>} : memref<32x128xf32, #tpu.memory_space<vmem>>, vector<32x128xf32>,
    return
  }
}

</mosaic_0001>

<bundles_post_ra>
// kernel: lstm_internal_layer.1
= control target key start
LH: loop header
LB: loop body
LE: loop exit
PB: predicated region body
PF: predicated region fallthrough
CT: control target
= control target key end

     0   :  { %s383_s0 = inlined_call_operand.vmem [shape: bf16[32,128], index: 0, kind: input, shape index: {}]   ;;  %s384_s1 = inlined_call_operand.vmem [shape: bf16[128,128], index: 1, kind: input, shape index: {}]   ;;  %s385_s2 = inlined_call_operand.vmem [shape: f32[1,128], index: 2, kind: input, shape index: {}]   ;;  %s386_s3 = inlined_call_operand.hbm [shape: f32[32,128], index: 3, kind: output, shape index: {}]  }
   0x1   :  { %v269_v0 = vld [vmem:[%s384_s1 + $0x38] sm:$0xff]  ;;  %v268_v1 = vld [vmem:[%s384_s1 + $0x30] sm:$0xff] }
   0x2   :  { %99 = vmatpush.bf16.msra.mxu0 %v269_v0  ;;  %270 = vmatpush.bf16.msra.mxu1 %v269_v0 }
   0x3   :  { %8 = vsyncpa [#allocation3], 0  ;;  %v267_v2 = vld [vmem:[%s384_s1 + $0x28] sm:$0xff]  ;;  %v266_v3 = vld [vmem:[%s384_s1 + $0x20] sm:$0xff]  ;;  %s204_s8 = sshll.u32 %s386_s3, 4  ;;  %s325_s9 = smov 128   ;;  %s205_s8 = int_to_ptr.hbm [resolvable:$true] %s204_s8 }
   0x4   :  { %v265_v4 = vld [vmem:[%s384_s1 + $0x18] sm:$0xff]  ;;  %v264_v5 = vld [vmem:[%s384_s1 + $0x10] sm:$0xff]  ;;  %v263_v6 = vld [vmem:[%s384_s1 + $0x8] sm:$0xff]  ;;  %s326_s10 = smov 8  }
   0x5   :  { %v262_v7 = vld [vmem:[%s384_s1] sm:$0xff]  ;;  %v261_v9 = vld [vmem:[%s383_s0 + $0x8] sm:$0xff] }
   0x6   :  { %100 = vmatpush.bf16.msra.mxu0 %v268_v1  ;;  %271 = vmatpush.bf16.msra.mxu1 %v268_v1  ;;  %v260_v8 = vld [vmem:[%s383_s0] sm:$0xff]  ;;  %s324_s0 = smov [#allocation2]  }
   0x7   :  { %v281_v10 = vld [vmem:[%s385_s2] ss:$0 sm:$0xff]  ;;  %s202_s1 = sshll.u32 %s324_s0, 4  ;;  %s203_s1 = int_to_ptr.vmem [resolvable:$true] %s202_s1 }
   0xa   :  { %101 = vmatpush.bf16.msra.mxu0 %v267_v2  ;;  %272 = vmatpush.bf16.msra.mxu1 %v267_v2 }
   0xe   :  { %102 = vmatpush.bf16.msra.mxu0 %v266_v3  ;;  %273 = vmatpush.bf16.msra.mxu1 %v266_v3 }
  0x12   :  { %103 = vmatpush.bf16.msra.mxu0 %v265_v4  ;;  %274 = vmatpush.bf16.msra.mxu1 %v265_v4 }
  0x16   :  { %104 = vmatpush.bf16.msra.mxu0 %v264_v5  ;;  %275 = vmatpush.bf16.msra.mxu1 %v264_v5 }
  0x1a   :  { %105 = vmatpush.bf16.msra.mxu0 %v263_v6  ;;  %276 = vmatpush.bf16.msra.mxu1 %v263_v6 }
  0x1e   :  { %106 = vmatpush.bf16.msra.mxu0 %v262_v7  ;;  %277 = vmatpush.bf16.msra.mxu1 %v262_v7 }
  0x21   :  { %107 = vmatmul.bf16.vlgmr.msra.gmra.mxu0 %v260_v8  ;;  %112 = vmatmul.bf16.vlgmr.msra.gmra.mxu1 %v261_v9 }
  0x9e   :  { %v108_v11 = vpop.f32.mrf.mxu0  ;;  %v113_v12 = vpop.f32.mrf.mxu1 }
  0x9f   :  { %v109_v13 = vadd.f32 %v281_v10, %v108_v11  ;;  %v114_v14 = vadd.f32 %v281_v10, %v113_v12 }
  0xa1   :  { %v256_v15 = vmul.f32 -1.442695, %v109_v13  ;;  %v258_v16 = vmul.f32 -1.442695, %v114_v14 }
  0xa3   :  { %282 = vpow2.f32 %v256_v15 }
  0xa4   :  { %284 = vpow2.f32 %v258_v16 }
  0xa6   :  { %v110_v17 = vpop.f32.mrf.mxu0  ;;  %v115_v18 = vpop.f32.mrf.mxu1 }
  0xa7   :  { %v111_v19 = vadd.f32 %v281_v10, %v110_v17  ;;  %v116_v20 = vadd.f32 %v281_v10, %v115_v18 }
  0xa9   :  { %v283_v21 = vpop.eup %282  ;;  %v257_v22 = vmul.f32 -1.442695, %v111_v19  ;;  %v259_v25 = vmul.f32 -1.442695, %v116_v20 }
  0xaa   :  { %v285_v23 = vpop.eup %284  ;;  %v130_v24 = vadd.f32 1.0, %v283_v21 }
  0xab   :  { %v132_v26 = vadd.f32 1.0, %v285_v23  ;;  %286 = vpow2.f32 %v257_v22 }
  0xac   :  { %288 = vrcp.f32 %v130_v24  ;;  %v143_v36 = vand.u32 2147483647, %v130_v24  ;;  %v145_v37 = vand.u32 2147483648, %v130_v24  ;;  %vm139_vm2 = vweird.f32 %v130_v24 }
  0xad   :  { %290 = vrcp.f32 %v132_v26  ;;  %v175_v40 = vand.u32 2147483648, %v132_v26  ;;  %v173_v42 = vand.u32 2147483647, %v132_v26  ;;  %vm169_vm4 = vweird.f32 %v132_v26 }
  0xae   :  { %292 = vpow2.f32 %v259_v25  ;;  %v146_v45 = vor.u32 1.1754944e-38, %v145_v37  ;;  %vm144_vm5 = vcmp.eq.f32.partialorder %v143_v36, 8.507059e+37 }
  0xaf   :  { %v176_v48 = vor.u32 1.1754944e-38, %v175_v40  ;;  %vm174_vm7 = vcmp.eq.f32.partialorder %v173_v42, 8.507059e+37 }
  0xb1   :  { %v287_v27 = vpop.eup %286 }
  0xb2   :  { %v289_v28 = vpop.eup %288  ;;  %v131_v29 = vadd.f32 1.0, %v287_v27 }
  0xb3   :  { %v291_v30 = vpop.eup %290  ;;  %v135_v31 = vmul.f32 %v289_v28, %v130_v24  ;;  %vm140_vm0 = vweird.f32 %v289_v28 }
  0xb4   :  { %v293_v32 = vpop.eup %292  ;;  %v165_v33 = vmul.f32 %v291_v30, %v132_v26  ;;  %294 = vrcp.f32 %v131_v29  ;;  %vm170_vm1 = vweird.f32 %v291_v30  ;;  %vm141_vm3 = vmor %vm139_vm2, %vm140_vm0  ;;  %v160_v55 = vand.u32 2147483648, %v131_v29 }
  0xb5   :  { %v136_v34 = vsub.f32 1.0, %v135_v31  ;;  %v133_v35 = vadd.f32 1.0, %v293_v32  ;;  %vm171_vm6 = vmor %vm169_vm4, %vm170_vm1  ;;  %v158_v58 = vand.u32 2147483647, %v131_v29  ;;  %vm154_vm9 = vweird.f32 %v131_v29 }
  0xb6   :  { %v166_v38 = vsub.f32 1.0, %v165_v33  ;;  %v161_v62 = vor.u32 1.1754944e-38, %v160_v55 }
  0xb7   :  { %v137_v39 = vmul.f32 %v289_v28, %v136_v34  ;;  %296 = vrcp.f32 %v133_v35  ;;  %v190_v61 = vand.u32 2147483648, %v133_v35  ;;  %v188_v0 = vand.u32 2147483647, %v133_v35 }
  0xb8   :  { %v167_v41 = vmul.f32 %v291_v30, %v166_v38  ;;  %vm159_vm12 = vcmp.eq.f32.partialorder %v158_v58, 8.507059e+37  ;;  %vm184_vm13 = vweird.f32 %v133_v35 }
  0xb9   :  { %v138_v43 = vadd.f32 %v289_v28, %v137_v39  ;;  %v191_v4 = vor.u32 1.1754944e-38, %v190_v61  ;;  %vm189_vm15 = vcmp.eq.f32.partialorder %v188_v0, 8.507059e+37 }
  0xba   :  { %v295_v44 = vpop.eup %294  ;;  %v168_v46 = vadd.f32 %v291_v30, %v167_v41 }
  0xbb   :  { %v142_v47 = vsel %vm141_vm3, %v289_v28, %v138_v43  ;;  %v150_v49 = vmul.f32 %v295_v44, %v131_v29  ;;  %vm155_vm8 = vweird.f32 %v295_v44 }
  0xbc   :  { %v147_v50 = vsel %vm144_vm5, %v146_v45, %v142_v47  ;;  %v172_v51 = vsel %vm171_vm6, %v291_v30, %v168_v46  ;;  %vm156_vm10 = vmor %vm154_vm9, %vm155_vm8 }
  0xbd   :  { %v297_v52 = vpop.eup %296  ;;  %194 = vst [vmem:[#allocation2] sm:$0xff] %v147_v50  ;;  %v177_v53 = vsel %vm174_vm7, %v176_v48, %v172_v51  ;;  %v151_v54 = vsub.f32 1.0, %v150_v49 }
  0xbe   :  { %196 = vst [vmem:[#allocation2 + $0x10] sm:$0xff] %v177_v53  ;;  %v180_v56 = vmul.f32 %v297_v52, %v133_v35  ;;  %vm185_vm11 = vweird.f32 %v297_v52 }
  0xbf   :  { %v152_v57 = vmul.f32 %v295_v44, %v151_v54  ;;  %vm186_vm14 = vmor %vm184_vm13, %vm185_vm11 }
  0xc0   :  { %v181_v59 = vsub.f32 1.0, %v180_v56 }
  0xc1   :  { %v153_v60 = vadd.f32 %v295_v44, %v152_v57 }
  0xc2   :  { %v182_v63 = vmul.f32 %v297_v52, %v181_v59 }
  0xc3   :  { %v157_v1 = vsel %vm156_vm10, %v295_v44, %v153_v60 }
  0xc4   :  { %v162_v2 = vsel %vm159_vm12, %v161_v62, %v157_v1  ;;  %v183_v3 = vadd.f32 %v297_v52, %v182_v63 }
  0xc5   :  { %195 = vst [vmem:[#allocation2 + $0x8] sm:$0xff] %v162_v2 }
  0xc6   :  { %v187_v5 = vsel %vm186_vm14, %v297_v52, %v183_v3 }
  0xc7   :  { %v192_v6 = vsel %vm189_vm15, %v191_v4, %v187_v5 }
  0xc8   :  { %197 = vst [vmem:[#allocation2 + $0x18] sm:$0xff] %v192_v6 }
  0xc9   :  { %210 = dma.vmem_to_hbm [thread:$0]  %s203_s1, 512, %s205_s8, [#allocation3], %s325_s9, %s325_s9, %s326_s10  }
  0xca   :  { %322 = dma.done.wait [#allocation3], 512  }
  0xcb   :  { %323 = vsyncadd [#allocation3], 4294966784 }
  0xcc   :  { %215 = vsyncpa [#allocation3], 1 }

</bundles_post_ra>
